<compile_context>
chip_gen: v7x
topology: tpu7x:2x2x1
jax: 0.10.0
libtpu: 0.0.40
codegen_flags: <defaults>
</compile_context>

<pallas_src>
import math

import jax
import jax.numpy as jnp
from jax.experimental import pallas as pl
from jax.experimental.pallas import tpu as pltpu


def _round_up(x, m):
    return ((x + m - 1) // m) * m


# ------------------------------ tile selection ----------------------------- #

def choose_classifier_tile(item_num, mlp_out, *, max_tn=1024, target_tiles=2):
    """Deterministic (TN, N_pad) for the streamed classifier weight.

    Used by BOTH make_unimind_params (one-time padding of Wc/bc) and
    unimind_classifier (grid / BlockSpecs), so no per-forward padding of Wc.
    """
    n128 = _round_up(max(item_num, 1), 128)
    tn = min(_round_up(max_tn, 128), n128)
    # keep the double-buffered Wc tile (2 * mlp_out * TN * 2B) comfortably small
    while tn > 128 and 2 * mlp_out * tn * 2 > 8 * 1024 * 1024:
        tn -= 128
    # v7x has 2 TensorCores: prefer >=2 grid tiles so "parallel" actually shards.
    if n128 > 128 and n128 // tn < target_tiles:
        tn = _round_up(-(-n128 // target_tiles), 128)
    n_pad = _round_up(max(item_num, 1), tn)
    return tn, n_pad


# ------------------------------- Pallas kernels ---------------------------- #

def mlp_kernel(x_ref, w1_ref, b1_ref, w2_ref, b2_ref, h2_ref):
    # fc1 + ReLU (bf16 in -> f32 accumulate)
    h1 = jnp.dot(x_ref[...], w1_ref[...], preferred_element_type=jnp.float32) + b1_ref[...]
    h1 = jnp.maximum(h1, 0.0)
    # fc2 + ReLU
    h2 = jnp.dot(h1.astype(w2_ref.dtype), w2_ref[...],
                 preferred_element_type=jnp.float32) + b2_ref[...]
    h2 = jnp.maximum(h2, 0.0)
    h2_ref[...] = h2.astype(h2_ref.dtype)


def classifier_kernel(h2_ref, wc_ref, bc_ref, out_ref):
    res = jnp.dot(h2_ref[...], wc_ref[...], preferred_element_type=jnp.float32) + bc_ref[...]
    out_ref[...] = res.astype(out_ref.dtype)


# --------------------------------- wrappers -------------------------------- #

def unimind_mlp(x_pad, w1, b1, w2, b2):
    """x_pad: (B_pad, d_model) bf16. Returns h2: (B_pad, mlp_out) bf16."""
    B_pad, d_model = x_pad.shape
    hidden = w1.shape[1]
    mlp_out = w2.shape[1]

    def full(shape):
        return pl.BlockSpec(shape, lambda i: (0,) * len(shape))

    flops = 2 * B_pad * (d_model * hidden + hidden * mlp_out)
    bytes_accessed = (x_pad.size * 2 + w1.size * 2 + w2.size * 2
                      + b1.size * 4 + b2.size * 4 + B_pad * mlp_out * 2)

    return pl.pallas_call(
        mlp_kernel,
        out_shape=jax.ShapeDtypeStruct((B_pad, mlp_out), jnp.bfloat16),
        grid=(1,),
        in_specs=[full((B_pad, d_model)), full((d_model, hidden)), full((1, hidden)),
                  full((hidden, mlp_out)), full((1, mlp_out))],
        out_specs=full((B_pad, mlp_out)),
        cost_estimate=pl.CostEstimate(flops=int(flops), transcendentals=0,
                                      bytes_accessed=int(bytes_accessed)),
    )(x_pad, w1, b1, w2, b2)


def unimind_classifier(h2, wc, bc, item_num, *, max_tn=1024):
    """h2: (B_pad, mlp_out) bf16; wc: (mlp_out, N_pad) bf16 (pre-padded); bc: (1, N_pad)."""
    B_pad, mlp_out = h2.shape
    TN, N_pad = choose_classifier_tile(item_num, mlp_out, max_tn=max_tn)

    # Wc/bc are pre-padded once in make_unimind_params; pad here only as a safety
    # fallback if externally-built params were not padded.
    if wc.shape[1] != N_pad:
        wc = jnp.pad(wc, ((0, 0), (0, N_pad - wc.shape[1])))
        bc = jnp.pad(bc, ((0, 0), (0, N_pad - bc.shape[1])))
    num_tiles = N_pad // TN

    in_specs = [
        pl.BlockSpec((B_pad, mlp_out), lambda j: (0, 0)),   # h2, VMEM-resident (same block each step)
        pl.BlockSpec((mlp_out, TN), lambda j: (0, j)),      # Wc tile (streamed, double-buffered)
        pl.BlockSpec((1, TN), lambda j: (0, j)),            # bc tile
    ]
    out_spec = pl.BlockSpec((B_pad, TN), lambda j: (0, j))

    # Explicit VMEM budget from actual buffers (v7x only has 64 MiB -> cap at 48 MiB).
    need = (2 * (mlp_out * TN * 2 + TN * 4 + B_pad * TN * 4)   # streamed Wc/bc/out (double-buffered)
            + 2 * (B_pad * mlp_out * 2)                        # resident h2
            + (2 << 20))                                       # margin / internal scratch
    vmem_limit = int(min(max(need, 8 << 20), 48 << 20))

    flops = 2 * B_pad * mlp_out * N_pad
    bytes_accessed = wc.size * 2 + bc.size * 4 + h2.size * 2 + B_pad * N_pad * 4

    out = pl.pallas_call(
        classifier_kernel,
        out_shape=jax.ShapeDtypeStruct((B_pad, N_pad), jnp.float32),
        grid=(num_tiles,),
        in_specs=in_specs,
        out_specs=out_spec,
        compiler_params=pltpu.CompilerParams(
            dimension_semantics=("parallel",),
            vmem_limit_bytes=vmem_limit,
        ),
        cost_estimate=pl.CostEstimate(flops=int(flops), transcendentals=0,
                                      bytes_accessed=int(bytes_accessed)),
    )(h2, wc, bc)
    return out


def unimind_head(encode_state, params, *, max_tn=1024):
    """encode_state: (B, d_model) f32. Returns logits (B, item_num) f32."""
    B, _ = encode_state.shape
    item_num = params["item_num"]

    # bf16 packs [16,128] per vreg -> pad batch to a multiple of 16.
    B_pad = _round_up(max(B, 1), 16)
    x = encode_state.astype(jnp.bfloat16)
    if B_pad != B:
        x = jnp.pad(x, ((0, B_pad - B), (0, 0)))

    h2 = unimind_mlp(x, params["w1"], params["b1"], params["w2"], params["b2"])
    out = unimind_classifier(h2, params["wc"], params["bc"], item_num, max_tn=max_tn)
    return out[:B, :item_num]


# --------------------------- parameter construction ------------------------ #

def xavier_uniform(key, out_features, in_features, dtype=jnp.float32):
    # matches torch.nn.init.xavier_uniform_ on an (out, in) Linear weight
    bound = math.sqrt(6.0 / (in_features + out_features))
    return jax.random.uniform(key, (out_features, in_features), dtype, -bound, bound)


def linear_bias(key, in_features, out_features, dtype=jnp.float32):
    # PyTorch nn.Linear default bias init (init_params leaves dim<=1 params untouched)
    bound = 1.0 / math.sqrt(in_features)
    return jax.random.uniform(key, (out_features,), dtype, -bound, bound)


def make_unimind_params(key, d_model, item_num, *, max_tn=1024):
    hidden = d_model // 2
    mlp_out = d_model // 4
    k1, k2, k3, k4, k5, k6 = jax.random.split(key, 6)
    # created as (out, in) like PyTorch, transposed to (in, out) for x @ W + b
    w1 = xavier_uniform(k1, hidden, d_model)
    b1 = linear_bias(k2, d_model, hidden)
    w2 = xavier_uniform(k3, mlp_out, hidden)
    b2 = linear_bias(k4, hidden, mlp_out)
    wc = xavier_uniform(k5, item_num, mlp_out)
    bc = linear_bias(k6, mlp_out, item_num)

    # One-time lane-aligned padding of the streamed classifier weight/bias
    # (avoids the per-forward jnp.pad copy of Wc, the dominant HBM operand).
    _, n_pad = choose_classifier_tile(item_num, mlp_out, max_tn=max_tn)
    wc_p = jnp.pad(wc.T, ((0, 0), (0, n_pad - item_num))).astype(jnp.bfloat16)
    bc_p = jnp.pad(bc.reshape(1, -1), ((0, 0), (0, n_pad - item_num)))

    return dict(
        w1=w1.T.astype(jnp.bfloat16), b1=b1.reshape(1, -1),
        w2=w2.T.astype(jnp.bfloat16), b2=b2.reshape(1, -1),
        wc=wc_p, bc=bc_p, item_num=item_num,
    )


def unimind_forward(decoder_hidden_last, params):
    """Eval-mode UniMind.forward after the BART call.

    decoder_hidden_last: (B, S, d_model) = outputs.decoder_hidden_states[-1]
    returns res: (B, item_num) classifier logits
    """
    # encode_state = decoder_hidden_states[-1][:, 0, :].squeeze(1)
    encode_state = decoder_hidden_last[:, 0, :]
    return unimind_head(encode_state, params)


# ------------------------------ reference check ---------------------------- #

def unimind_forward_ref(decoder_hidden_last, params):
    # Mirrors the kernel's bf16-in / f32-accumulate numerics.
    x = decoder_hidden_last[:, 0, :].astype(jnp.bfloat16)
    h1 = jnp.dot(x, params["w1"], preferred_element_type=jnp.float32) + params["b1"]
    h1 = jnp.maximum(h1, 0.0)
    h2 = jnp.dot(h1.astype(jnp.bfloat16), params["w2"],
                 preferred_element_type=jnp.float32) + params["b2"]
    h2 = jnp.maximum(h2, 0.0)
    logits = jnp.dot(h2.astype(jnp.bfloat16), params["wc"],
                     preferred_element_type=jnp.float32) + params["bc"]
    return logits[:, :params["item_num"]]


if __name__ == "__main__":
    B, S, d_model, item_num = 2, 8, 32, 10

    key = jax.random.PRNGKey(0)
    k_params, k_hidden = jax.random.split(key)

    params = make_unimind_params(k_params, d_model, item_num)

    # TODO(synk): stand-in for BART decoder_hidden_states[-1]
    decoder_hidden_last = jax.random.normal(k_hidden, (B, S, d_model), jnp.float32)

    res = unimind_forward(decoder_hidden_last, params)
    res = jax.block_until_ready(res)

    ref = unimind_forward_ref(decoder_hidden_last, params)
    assert res.shape == (B, item_num)
    assert jnp.allclose(res, ref, atol=1e-2, rtol=1e-2), "mismatch vs reference"

    print("KERNEL_OK")
</pallas_src>

<mosaic_0001>
module attributes {stable_mosaic.version = 11 : i64} {
  func.func @mlp_kernel(%arg0: i32, %arg1: memref<16x32xbf16, #tpu.memory_space<vmem>>, %arg2: memref<32x16xbf16, #tpu.memory_space<vmem>>, %arg3: memref<1x16xf32, #tpu.memory_space<vmem>>, %arg4: memref<16x8xbf16, #tpu.memory_space<vmem>>, %arg5: memref<1x8xf32, #tpu.memory_space<vmem>>, %arg6: memref<16x8xbf16, #tpu.memory_space<vmem>>) attributes {dimension_semantics = [#tpu.dimension_semantics<arbitrary>], iteration_bounds = array<i64: 1>, scalar_prefetch = 0 : i64, scratch_operands = 0 : i64, tpu.core_type = #tpu.core_type<tc>, window_params = [{pipeline_mode = #tpu.pipeline_mode<synchronous>, transform_indices = @transform_0, window_bounds = array<i64: 16, 32>}, {pipeline_mode = #tpu.pipeline_mode<synchronous>, transform_indices = @transform_1, window_bounds = array<i64: 32, 16>}, {pipeline_mode = #tpu.pipeline_mode<synchronous>, transform_indices = @transform_2, window_bounds = array<i64: 1, 16>}, {pipeline_mode = #tpu.pipeline_mode<synchronous>, transform_indices = @transform_3, window_bounds = array<i64: 16, 8>}, {pipeline_mode = #tpu.pipeline_mode<synchronous>, transform_indices = @transform_4, window_bounds = array<i64: 1, 8>}, {pipeline_mode = #tpu.pipeline_mode<synchronous>, transform_indices = @transform_5, window_bounds = array<i64: 16, 8>}]} {
    %c0 = arith.constant 0 : index
    %c0_0 = arith.constant 0 : index
    %0 = vector.load %arg1[%c0, %c0_0] : memref<16x32xbf16, #tpu.memory_space<vmem>>, vector<16x32xbf16>
    %c0_1 = arith.constant 0 : index
    %c0_2 = arith.constant 0 : index
    %1 = vector.load %arg2[%c0_1, %c0_2] : memref<32x16xbf16, #tpu.memory_space<vmem>>, vector<32x16xbf16>
    %cst = arith.constant dense<0.000000e+00> : vector<16x16xf32>
    %2 = tpu.matmul %0, %1, %cst {dimension_numbers = #tpu.dot_dimension_numbers<[1], [0], [0], [1], [0, 0, 1, 1], [], []>} : vector<16x32xbf16>, vector<32x16xbf16>, vector<16x16xf32> -> vector<16x16xf32>
    %c0_3 = arith.constant 0 : index
    %c0_4 = arith.constant 0 : index
    %3 = vector.load %arg3[%c0_3, %c0_4] : memref<1x16xf32, #tpu.memory_space<vmem>>, vector<1x16xf32>
    %4 = vector.broadcast %3 : vector<1x16xf32> to vector<16x16xf32>
    %5 = arith.addf %2, %4 : vector<16x16xf32>
    %cst_5 = arith.constant 0.000000e+00 : f32
    %6 = vector.broadcast %cst_5 : f32 to vector<16x16xf32>
    %7 = arith.maximumf %5, %6 : vector<16x16xf32>
    %8 = arith.truncf %7 : vector<16x16xf32> to vector<16x16xbf16>
    %c0_6 = arith.constant 0 : index
    %c0_7 = arith.constant 0 : index
    %9 = vector.load %arg4[%c0_6, %c0_7] : memref<16x8xbf16, #tpu.memory_space<vmem>>, vector<16x8xbf16>
    %cst_8 = arith.constant dense<0.000000e+00> : vector<16x8xf32>
    %10 = tpu.matmul %8, %9, %cst_8 {dimension_numbers = #tpu.dot_dimension_numbers<[1], [0], [0], [1], [0, 0, 1, 1], [], []>} : vector<16x16xbf16>, vector<16x8xbf16>, vector<16x8xf32> -> vector<16x8xf32>
    %c0_9 = arith.constant 0 : index
    %c0_10 = arith.constant 0 : index
    %11 = vector.load %arg5[%c0_9, %c0_10] : memref<1x8xf32, #tpu.memory_space<vmem>>, vector<1x8xf32>
    %12 = vector.broadcast %11 : vector<1x8xf32> to vector<16x8xf32>
    %13 = arith.addf %10, %12 : vector<16x8xf32>
    %cst_11 = arith.constant 0.000000e+00 : f32
    %14 = vector.broadcast %cst_11 : f32 to vector<16x8xf32>
    %15 = arith.maximumf %13, %14 : vector<16x8xf32>
    %16 = arith.truncf %15 : vector<16x8xf32> to vector<16x8xbf16>
    %c0_12 = arith.constant 0 : index
    %c0_13 = arith.constant 0 : index
    %17 = vector.load %arg6[%c0_12, %c0_13] : memref<16x8xbf16, #tpu.memory_space<vmem>>, vector<16x8xbf16>
    tpu.vector_store %arg6[%c0_12, %c0_13], %16 {strides = array<i32>} : memref<16x8xbf16, #tpu.memory_space<vmem>>, vector<16x8xbf16>,
    return
  }
  func.func @transform_0(%arg0: i32) -> (i32, i32) {
    %c0_i32 = arith.constant 0 : i32
    %c0_i32_0 = arith.constant 0 : i32
    %c0_i32_1 = arith.constant 0 : i32
    return %c0_i32, %c0_i32_0 : i32, i32
  }
  func.func @transform_1(%arg0: i32) -> (i32, i32) {
    %c0_i32 = arith.constant 0 : i32
    %c0_i32_0 = arith.constant 0 : i32
    %c0_i32_1 = arith.constant 0 : i32
    return %c0_i32, %c0_i32_0 : i32, i32
  }
  func.func @transform_2(%arg0: i32) -> (i32, i32) {
    %c0_i32 = arith.constant 0 : i32
    %c0_i32_0 = arith.constant 0 : i32
    %c0_i32_1 = arith.constant 0 : i32
    return %c0_i32, %c0_i32_0 : i32, i32
  }
  func.func @transform_3(%arg0: i32) -> (i32, i32) {
    %c0_i32 = arith.constant 0 : i32
    %c0_i32_0 = arith.constant 0 : i32
    %c0_i32_1 = arith.constant 0 : i32
    return %c0_i32, %c0_i32_0 : i32, i32
  }
  func.func @transform_4(%arg0: i32) -> (i32, i32) {
    %c0_i32 = arith.constant 0 : i32
    %c0_i32_0 = arith.constant 0 : i32
    %c0_i32_1 = arith.constant 0 : i32
    return %c0_i32, %c0_i32_0 : i32, i32
  }
  func.func @transform_5(%arg0: i32) -> (i32, i32) {
    %c0_i32 = arith.constant 0 : i32
    %c0_i32_0 = arith.constant 0 : i32
    %c0_i32_1 = arith.constant 0 : i32
    return %c0_i32, %c0_i32_0 : i32, i32
  }
}

</mosaic_0001>

<bundles_post_ra>
// kernel: tpu_custom_call.1
= control target key start
LH: loop header
LB: loop body
LE: loop exit
PB: predicated region body
PF: predicated region fallthrough
CT: control target
= control target key end

     0   :  { %v213_v0 = vmov 0.0   ;;  %vm214_vm0 = vmmov 0   ;;  %vm51_vm1 = vcmask 261120   ;;  %vm114_vm2 = vcmask 130048   ;;  %s269_s1 = inlined_call_operand.vmem [shape: bf16[32,16], index: 1, kind: input, shape index: {}]   ;;  %s270_s0 = inlined_call_operand.vmem [shape: bf16[16,32], index: 0, kind: input, shape index: {}]   ;;  %s271_s3 = inlined_call_operand.vmem [shape: bf16[16,8], index: 3, kind: input, shape index: {}]   ;;  %s272_s2 = inlined_call_operand.vmem [shape: f32[1,16], index: 2, kind: input, shape index: {}]   ;;  %s273_s4 = inlined_call_operand.vmem [shape: f32[1,8], index: 4, kind: input, shape index: {}]   ;;  %s274_s5 = inlined_call_operand.vmem [shape: bf16[16,8], index: 5, kind: output, shape index: {}]  }
   0x1   :  { %193 = vmatprep.subr.bf16.mxu0 %v213_v0  ;;  %v209_v1 = vld [vmem:[%s269_s1] sm:$0xff]   ;;  %197 = vmatprep.mubr.msk.bf16.mxu0 %vm214_vm0, %v213_v0  ;;  %v210_v2 = vld [vmem:[%s269_s1 + $0x8] sm:$0xff]   ;;  %vm169_vm3 = vcmask 60416  }
   0x2   :  { %201 = vmatprep.subr.bf16.mxu1 %v213_v0  ;;  %203 = vmatprep.mubr.msk.bf16.mxu1 %vm214_vm0, %v213_v0  ;;  %v211_v3 = vld [vmem:[%s270_s0] sm:$0xff]  }
   0x3   :  { %194 = vmatpush3.bf16.msra.mxu0 %v209_v1  ;;  %v212_v4 = vld [vmem:[%s271_s3] sm:$0xff]  }
   0x4   :  { %195 = vmatprep.subr.bf16.mxu0 %v213_v0  ;;  %202 = vmatpush3.bf16.msra.mxu1 %v212_v4  ;;  %v176_v5 = vld [vmem:[%s272_s2] ss:$0 sm:$0xff] }
   0x5   :  { %v181_v15 = vld [vmem:[%s273_s4] ss:$0 sm:$0xff] }
   0x7   :  { %196 = vmatpush3.bf16.msra.mxu0 %v210_v2 }
   0xa   :  { %198 = vmatmul.mubr.msk.bf16.vlgmr.msra.gmra.mrb[0].mxu0 %vm51_vm1, %v211_v3 }
  0xdd   :  { %v89_v6 = vpop.f32.mrb[0].mxu0 }
  0xde   :  { %v90_v7 = vadd.f32 %v176_v5, %v89_v6  ;;  %v199_v8 = vpop.f32.mrb[1].mxu0 }
  0xdf   :  { %v92_v9 = vpop.f32.mrb[2].mxu0 }
  0xe0   :  { %v93_v10 = vadd.f32 %v176_v5, %v92_v9  ;;  %v200_v11 = vpop.f32.mrb[3].mxu0  ;;  %v96_v12 = vmax.f32 %v90_v7, 0.0 }
  0xe2   :  { %v97_v13 = vmax.f32 %v93_v10, 0.0 }
  0xe4   :  { %v98_v14 = vpack.c.bf16 %v97_v13, %v96_v12 }
  0xe6   :  { %204 = vmatmul.mubr.msk.bf16.vlgmr.msra.gmra.mrb[0].mxu1 %vm114_vm2, %v98_v14 }
 0x1b9   :  { %v152_v16 = vpop.f32.mrb[0].mxu1 }
 0x1ba   :  { %v153_v17 = vadd.f32 %v181_v15, %v152_v16  ;;  %v205_v18 = vpop.f32.mrb[1].mxu1 }
 0x1bb   :  { %v155_v19 = vpop.f32.mrb[2].mxu1 }
 0x1bc   :  { %v159_v20 = vmax.f32 %v153_v17, 0.0  ;;  %v156_v21 = vadd.f32 %v181_v15, %v155_v19  ;;  %v206_v22 = vpop.f32.mrb[3].mxu1 }
 0x1be   :  { %v186_v23 = vpack.c.bf16 %v159_v20, %v159_v20  ;;  %v160_v24 = vmax.f32 %v156_v21, 0.0 }
 0x1c0   :  { %170 = vst.msk [vmem:[%s274_s5] sm:$0xf] %vm169_vm3, %v186_v23  ;;  %v187_v25 = vpack.c.bf16 %v160_v24, %v160_v24 }
 0x1c2   :  { %171 = vst.msk [vmem:[%s274_s5 + $0x4] sm:$0xf] %vm169_vm3, %v187_v25 }

</bundles_post_ra>
